<compile_context>
chip_gen: v6e
topology: v6e:2x2x1
jax: 0.10.0
libtpu: 0.0.40
codegen_flags: <defaults>
</compile_context>

<pallas_src>
import functools

import jax
import jax.numpy as jnp
from jax import lax
from jax.experimental import pallas as pl
from jax.experimental.pallas import tpu as pltpu

# Synthetic, deterministic label dictionary (stands in for the opt.label_dict
# file that the original __init__ reads from disk).
LABELS = ["<s>", "</s>", "B-NP", "I-NP", "B-VP", "I-VP", "O"]
LABEL_TO_IDX = {s: i for i, s in enumerate(LABELS)}

# 'A implies -(B)' -> operator 'subtract', right multiplier -1:
#   constraint_loss += -sum( max(1 - pred[..., A], 1 - pred[..., B]) )
CONSTRAINTS = [("B-VP", "I-NP"), ("B-NP", "I-VP"), ("O", "I-NP"), ("O", "I-VP")]
CONSTRAINT_IDX = tuple((LABEL_TO_IDX[l], LABEL_TO_IDX[r]) for l, r in CONSTRAINTS)


def godel_loss_kernel(pred_ref, code_ref, loss_ref, ncorrect_ref,
                      min_sc, csum_sc, cnt_sc,
                      *, constraint_idx, constraints_lambda, n_real):
    step = pl.program_id(0)

    @pl.when(step == 0)
    def _init():
        min_sc[0] = jnp.float32(jnp.inf)
        csum_sc[0] = jnp.float32(0.0)
        cnt_sc[0] = jnp.float32(0.0)

    pred = pred_ref[...].astype(jnp.float32)      # (L, T) lane-dense tile
    code = code_ref[...]                          # (1, T) int32 packed codes
    L, T = pred.shape

    # Decode: code = gold | (16 if inner-seq-position else 0); padded cols = 15.
    countable = code >= 16                        # inner positions (real only)
    gold = jnp.bitwise_and(code, 15)              # (1, T) int32; 15 on padding

    lbl_i = lax.broadcasted_iota(jnp.int32, (L, T), 0)    # label index per row
    lbl_f = lbl_i.astype(jnp.float32)

    # --- get_godel_loss: running min of the correct-class probability --------
    # Padded columns have gold = 15 -> never selected -> +inf (no mask needed).
    sel = jnp.where(lbl_i == gold, pred, jnp.float32(jnp.inf))
    min_sc[0] = jnp.minimum(min_sc[0], jnp.min(sel))

    # --- constraint terms -----------------------------------------------------
    # sum_n max(1 - pL, 1 - pR) = n_real - sum_n min(pL, pR); accumulate only
    # the pairwise-min sum here (padded columns are zero -> contribute 0) and
    # add the static n_real correction once at finalize.
    rows = {}
    for li, ri in constraint_idx:
        for idx in (li, ri):
            if idx not in rows:
                rows[idx] = pred[idx:idx + 1, :]
    pair_sum = None
    for li, ri in constraint_idx:
        t = jnp.minimum(rows[li], rows[ri])
        pair_sum = t if pair_sum is None else pair_sum + t
    csum_sc[0] = csum_sc[0] + jnp.sum(pair_sum)

    # --- count_correct_labels on inner positions (seq index 1..S-2) ----------
    # First-argmax (matches jnp.argmax tie-breaking) via sublane reductions.
    run_max = jnp.max(pred, axis=0, keepdims=True)                  # (1, T)
    is_max = pred == run_max                                        # (L, T)
    first_arg = jnp.min(jnp.where(is_max, lbl_f, jnp.float32(L)),
                        axis=0, keepdims=True)                      # (1, T) f32
    hit = countable & (first_arg == gold.astype(jnp.float32))
    cnt_sc[0] = cnt_sc[0] + jnp.sum(hit.astype(jnp.float32))

    @pl.when(step == pl.num_programs(0) - 1)
    def _finalize():
        # constraint_loss = sum_c(-sum_n max(1-pL, 1-pR))
        #                 = csum_total - num_constraints * n_real
        closs = csum_sc[0] - jnp.float32(len(constraint_idx) * n_real)
        loss_ref[0, 0] = -min_sc[0] + jnp.float32(constraints_lambda) * closs
        ncorrect_ref[0, 0] = cnt_sc[0].astype(jnp.int32)


def godel_loss(pred, gold, constraints_lambda=0.001, tile=32768):
    """Returns (loss, num_correct) — loss matches GodelLoss.forward's return."""
    B, S, L = pred.shape
    N = B * S
    tile = max(128, (int(tile) // 128) * 128)

    # Lane-dense [L, N] layout (layout plumbing only; native dtype preserved).
    # TODO(synk): the wrapper transpose costs one extra HBM read+write pass of
    # pred; consuming the natural (N, L) layout in-kernel was evaluated but is
    # far worse (7/128 lane occupancy -> ~16x the VPU work).
    pred_t = jnp.transpose(pred.reshape(N, L))               # (L, N)

    # Pack gold + inner-position flag into one int32 code per position.
    seq_idx = jnp.arange(N, dtype=jnp.int32) % jnp.int32(S)
    inner = (seq_idx >= 1) & (seq_idx <= S - 2)
    code = gold.reshape(N).astype(jnp.int32) + 16 * inner.astype(jnp.int32)

    # Pad N to a lane-dense multiple of 128 (and of the tile when tiling).
    if N <= tile:
        tile_n = pl.cdiv(N, 128) * 128
    else:
        tile_n = tile
    n_pad = pl.cdiv(N, tile_n) * tile_n
    pad = n_pad - N
    if pad:
        pred_t = jnp.pad(pred_t, ((0, 0), (0, pad)))              # zeros
        code = jnp.pad(code, (0, pad), constant_values=15)        # gold sentinel
    code = code.reshape(1, n_pad)
    num_tiles = n_pad // tile_n

    kernel = functools.partial(
        godel_loss_kernel,
        constraint_idx=CONSTRAINT_IDX,
        constraints_lambda=float(constraints_lambda),
        n_real=int(N),
    )

    grid_spec = pltpu.PrefetchScalarGridSpec(
        num_scalar_prefetch=0,
        grid=(num_tiles,),
        in_specs=[
            pl.BlockSpec((L, tile_n), lambda i: (0, i)),      # pred tile (VMEM)
            pl.BlockSpec((1, tile_n), lambda i: (0, i)),      # code tile (VMEM)
        ],
        out_specs=(
            pl.BlockSpec((1, 1), lambda i: (0, 0),
                         memory_space=pltpu.MemorySpace.SMEM),
            pl.BlockSpec((1, 1), lambda i: (0, 0),
                         memory_space=pltpu.MemorySpace.SMEM),
        ),
        scratch_shapes=[
            pltpu.SMEM((1,), jnp.float32),   # running min of correct prob
            pltpu.SMEM((1,), jnp.float32),   # running sum of pairwise mins
            pltpu.SMEM((1,), jnp.float32),   # running correct count
        ],
    )

    itemsize = jnp.dtype(pred_t.dtype).itemsize
    cost = pl.CostEstimate(
        flops=int(n_pad) * (3 * L + 18),
        transcendentals=0,
        bytes_accessed=int(n_pad) * (L * itemsize + 4) + 8,
    )

    # TODO(synk): on v7x, split the grid axis with per-core partial outputs to
    # use both TensorCores; the carried scalar accumulators force "arbitrary".
    loss, ncorrect = pl.pallas_call(
        kernel,
        out_shape=(jax.ShapeDtypeStruct((1, 1), jnp.float32),
                   jax.ShapeDtypeStruct((1, 1), jnp.int32)),
        grid_spec=grid_spec,
        compiler_params=pltpu.CompilerParams(
            dimension_semantics=("arbitrary",)),
        cost_estimate=cost,
    )(pred_t, code)
    return loss[0, 0], ncorrect[0, 0]


def godel_loss_ref(pred, gold, constraints_lambda=0.001):
    """Plain-JAX reference mirroring the PyTorch forward."""
    correct = jnp.take_along_axis(pred, gold[..., None], axis=2)[..., 0]
    loss = -jnp.min(correct)
    closs = 0.0
    for li, ri in CONSTRAINT_IDX:
        closs = closs + (-jnp.sum(jnp.maximum(1.0 - pred[:, :, li],
                                              1.0 - pred[:, :, ri])))
    loss = loss + constraints_lambda * closs
    ncorrect = jnp.sum(
        (jnp.argmax(pred[:, 1:-1, :], axis=-1) == gold[:, 1:-1]).astype(jnp.int32))
    return loss, ncorrect


if __name__ == "__main__":
    key = jax.random.PRNGKey(0)
    L = len(LABELS)  # num_label == opt.num_label + 2 == 7

    # Small shapes implied by the module: batch=2, seq=8, num_label=7.
    B, S = 2, 8
    k1, k2, k3, k4 = jax.random.split(key, 4)
    pred = jax.nn.softmax(jax.random.normal(k1, (B, S, L), dtype=jnp.float32),
                          axis=-1)
    gold = jax.random.randint(k2, (B, S), 0, L, dtype=jnp.int32)

    loss, ncorrect = godel_loss(pred, gold)
    jax.block_until_ready((loss, ncorrect))
    ref_loss, ref_ncorrect = godel_loss_ref(pred, gold)
    assert jnp.allclose(loss, ref_loss, atol=1e-5, rtol=1e-5), (loss, ref_loss)
    assert int(ncorrect) == int(ref_ncorrect), (ncorrect, ref_ncorrect)

    # Second check exercising the multi-tile grid, accumulation and padding
    # masking paths (N = 300 -> padded to 384, 3 grid steps with tile=128).
    B2, S2 = 3, 100
    pred2 = jax.nn.softmax(jax.random.normal(k3, (B2, S2, L), dtype=jnp.float32),
                           axis=-1)
    gold2 = jax.random.randint(k4, (B2, S2), 0, L, dtype=jnp.int32)
    loss2, ncorrect2 = godel_loss(pred2, gold2, tile=128)
    jax.block_until_ready((loss2, ncorrect2))
    ref_loss2, ref_ncorrect2 = godel_loss_ref(pred2, gold2)
    assert jnp.allclose(loss2, ref_loss2, atol=1e-4, rtol=1e-4), (loss2, ref_loss2)
    assert int(ncorrect2) == int(ref_ncorrect2), (ncorrect2, ref_ncorrect2)

    print("KERNEL_OK")
</pallas_src>

<mosaic_0001>
module attributes {stable_mosaic.version = 11 : i64} {
  func.func @godel_loss_kernel(%arg0: i32, %arg1: memref<7x128xf32, #tpu.memory_space<vmem>>, %arg2: memref<1x128xi32, #tpu.memory_space<vmem>>, %arg3: memref<1x1xf32, #tpu.memory_space<smem>>, %arg4: memref<1x1xi32, #tpu.memory_space<smem>>, %arg5: memref<1xf32, #tpu.memory_space<smem>>, %arg6: memref<1xf32, #tpu.memory_space<smem>>, %arg7: memref<1xf32, #tpu.memory_space<smem>>) attributes {dimension_semantics = [#tpu.dimension_semantics<arbitrary>], iteration_bounds = array<i64: 1>, scalar_prefetch = 0 : i64, scratch_operands = 3 : i64, tpu.core_type = #tpu.core_type<tc>, window_params = [{transform_indices = @transform_0, window_bounds = array<i64: 7, 128>}, {transform_indices = @transform_1, window_bounds = array<i64: 1, 128>}, {transform_indices = @transform_2, window_bounds = array<i64: 1, 1>}, {transform_indices = @transform_3, window_bounds = array<i64: 1, 1>}]} {
    %c0_i32 = arith.constant 0 : i32
    %0 = arith.cmpi eq, %arg0, %c0_i32 : i32
    %1 = arith.extui %0 : i1 to i32
    %c0_i32_0 = arith.constant 0 : i32
    %2 = arith.cmpi ne, %1, %c0_i32_0 : i32
    scf.if %2 {
      %cst_18 = arith.constant 0x7F800000 : f32
      %c0_19 = arith.constant 0 : index
      %64 = memref.load %arg5[%c0_19] : memref<1xf32, #tpu.memory_space<smem>>
      memref.store %cst_18, %arg5[%c0_19] : memref<1xf32, #tpu.memory_space<smem>>
      %cst_20 = arith.constant 0.000000e+00 : f32
      %c0_21 = arith.constant 0 : index
      %65 = memref.load %arg6[%c0_21] : memref<1xf32, #tpu.memory_space<smem>>
      memref.store %cst_20, %arg6[%c0_21] : memref<1xf32, #tpu.memory_space<smem>>
      %cst_22 = arith.constant 0.000000e+00 : f32
      %c0_23 = arith.constant 0 : index
      %66 = memref.load %arg7[%c0_23] : memref<1xf32, #tpu.memory_space<smem>>
      memref.store %cst_22, %arg7[%c0_23] : memref<1xf32, #tpu.memory_space<smem>>
    } else {
    }
    %c0 = arith.constant 0 : index
    %c0_1 = arith.constant 0 : index
    %3 = vector.load %arg1[%c0, %c0_1] : memref<7x128xf32, #tpu.memory_space<vmem>>, vector<7x128xf32>
    %c0_2 = arith.constant 0 : index
    %c0_3 = arith.constant 0 : index
    %4 = vector.load %arg2[%c0_2, %c0_3] : memref<1x128xi32, #tpu.memory_space<vmem>>, vector<1x128xi32>
    %c16_i32 = arith.constant 16 : i32
    %5 = vector.broadcast %c16_i32 : i32 to vector<1x128xi32>
    %6 = arith.cmpi sge, %4, %5 : vector<1x128xi32>
    %c15_i32 = arith.constant 15 : i32
    %7 = vector.broadcast %c15_i32 : i32 to vector<1x128xi32>
    %8 = arith.andi %4, %7 : vector<1x128xi32>
    %9 = tpu.iota {dimensions = array<i32: 0>} : vector<7x128xi32>
    %10 = arith.sitofp %9 : vector<7x128xi32> to vector<7x128xf32>
    %11 = vector.broadcast %8 : vector<1x128xi32> to vector<7x128xi32>
    %12 = arith.cmpi eq, %9, %11 : vector<7x128xi32>
    %cst = arith.constant 0x7F800000 : f32
    %13 = vector.broadcast %cst : f32 to vector<7x128xf32>
    %14 = arith.select %12, %3, %13 : vector<7x128xi1>, vector<7x128xf32>
    %c0_4 = arith.constant 0 : index
    %15 = memref.load %arg5[%c0_4] : memref<1xf32, #tpu.memory_space<smem>>
    %16 = vector.shape_cast %14 : vector<7x128xf32> to vector<1x7x128xf32>
    %cst_5 = arith.constant dense<0x7F800000> : vector<1xf32>
    %17 = vector.multi_reduction <minimumf>, %16, %cst_5 [1, 2] : vector<1x7x128xf32> to vector<1xf32>
    %18 = vector.shape_cast %17 : vector<1xf32> to vector<1x1x1xf32>
    %19 = vector.extract %18[0, 0, 0] : f32 from vector<1x1x1xf32>
    %20 = arith.minimumf %15, %19 : f32
    %c0_6 = arith.constant 0 : index
    %21 = memref.load %arg5[%c0_6] : memref<1xf32, #tpu.memory_space<smem>>
    memref.store %20, %arg5[%c0_6] : memref<1xf32, #tpu.memory_space<smem>>
    %22 = vector.extract_strided_slice %3 {offsets = [4, 0], sizes = [1, 128], strides = [1, 1]} : vector<7x128xf32> to vector<1x128xf32>
    %23 = vector.extract_strided_slice %3 {offsets = [3, 0], sizes = [1, 128], strides = [1, 1]} : vector<7x128xf32> to vector<1x128xf32>
    %24 = vector.extract_strided_slice %3 {offsets = [2, 0], sizes = [1, 128], strides = [1, 1]} : vector<7x128xf32> to vector<1x128xf32>
    %25 = vector.extract_strided_slice %3 {offsets = [5, 0], sizes = [1, 128], strides = [1, 1]} : vector<7x128xf32> to vector<1x128xf32>
    %26 = vector.extract_strided_slice %3 {offsets = [6, 0], sizes = [1, 128], strides = [1, 1]} : vector<7x128xf32> to vector<1x128xf32>
    %27 = arith.minimumf %22, %23 : vector<1x128xf32>
    %28 = arith.minimumf %24, %25 : vector<1x128xf32>
    %29 = arith.addf %27, %28 : vector<1x128xf32>
    %30 = arith.minimumf %26, %23 : vector<1x128xf32>
    %31 = arith.addf %29, %30 : vector<1x128xf32>
    %32 = arith.minimumf %26, %25 : vector<1x128xf32>
    %33 = arith.addf %31, %32 : vector<1x128xf32>
    %c0_7 = arith.constant 0 : index
    %34 = memref.load %arg6[%c0_7] : memref<1xf32, #tpu.memory_space<smem>>
    %35 = vector.shape_cast %33 : vector<1x128xf32> to vector<1x1x128xf32>
    %cst_8 = arith.constant dense<0.000000e+00> : vector<1xf32>
    %36 = vector.multi_reduction <add>, %35, %cst_8 [1, 2] : vector<1x1x128xf32> to vector<1xf32>
    %37 = vector.shape_cast %36 : vector<1xf32> to vector<1x1x1xf32>
    %38 = vector.extract %37[0, 0, 0] : f32 from vector<1x1x1xf32>
    %39 = arith.addf %34, %38 : f32
    %c0_9 = arith.constant 0 : index
    %40 = memref.load %arg6[%c0_9] : memref<1xf32, #tpu.memory_space<smem>>
    memref.store %39, %arg6[%c0_9] : memref<1xf32, #tpu.memory_space<smem>>
    %cst_10 = arith.constant dense<0xFF800000> : vector<128xf32>
    %41 = vector.multi_reduction <maximumf>, %3, %cst_10 [0] : vector<7x128xf32> to vector<128xf32>
    %42 = vector.shape_cast %41 : vector<128xf32> to vector<1x128xf32>
    %43 = vector.broadcast %42 : vector<1x128xf32> to vector<7x128xf32>
    %44 = arith.cmpf oeq, %3, %43 : vector<7x128xf32>
    %cst_11 = arith.constant 7.000000e+00 : f32
    %45 = vector.broadcast %cst_11 : f32 to vector<7x128xf32>
    %46 = arith.select %44, %10, %45 : vector<7x128xi1>, vector<7x128xf32>
    %cst_12 = arith.constant dense<0x7F800000> : vector<128xf32>
    %47 = vector.multi_reduction <minimumf>, %46, %cst_12 [0] : vector<7x128xf32> to vector<128xf32>
    %48 = vector.shape_cast %47 : vector<128xf32> to vector<1x128xf32>
    %49 = arith.sitofp %8 : vector<1x128xi32> to vector<1x128xf32>
    %50 = arith.cmpf oeq, %48, %49 : vector<1x128xf32>
    %51 = arith.andi %6, %50 : vector<1x128xi1>
    %c0_13 = arith.constant 0 : index
    %52 = memref.load %arg7[%c0_13] : memref<1xf32, #tpu.memory_space<smem>>
    %53 = arith.extui %51 : vector<1x128xi1> to vector<1x128xi32>
    %54 = arith.sitofp %53 : vector<1x128xi32> to vector<1x128xf32>
    %55 = vector.shape_cast %54 : vector<1x128xf32> to vector<1x1x128xf32>
    %cst_14 = arith.constant dense<0.000000e+00> : vector<1xf32>
    %56 = vector.multi_reduction <add>, %55, %cst_14 [1, 2] : vector<1x1x128xf32> to vector<1xf32>
    %57 = vector.shape_cast %56 : vector<1xf32> to vector<1x1x1xf32>
    %58 = vector.extract %57[0, 0, 0] : f32 from vector<1x1x1xf32>
    %59 = arith.addf %52, %58 : f32
    %c0_15 = arith.constant 0 : index
    %60 = memref.load %arg7[%c0_15] : memref<1xf32, #tpu.memory_space<smem>>
    memref.store %59, %arg7[%c0_15] : memref<1xf32, #tpu.memory_space<smem>>
    %c0_i32_16 = arith.constant 0 : i32
    %61 = arith.cmpi eq, %arg0, %c0_i32_16 : i32
    %62 = arith.extui %61 : i1 to i32
    %c0_i32_17 = arith.constant 0 : i32
    %63 = arith.cmpi ne, %62, %c0_i32_17 : i32
    scf.if %63 {
      %c0_18 = arith.constant 0 : index
      %64 = memref.load %arg6[%c0_18] : memref<1xf32, #tpu.memory_space<smem>>
      %cst_19 = arith.constant 6.400000e+01 : f32
      %65 = arith.subf %64, %cst_19 : f32
      %c0_20 = arith.constant 0 : index
      %66 = memref.load %arg5[%c0_20] : memref<1xf32, #tpu.memory_space<smem>>
      %cst_21 = arith.constant 0.000000e+00 : f32
      %67 = arith.subf %cst_21, %66 : f32
      %cst_22 = arith.constant 1.000000e-03 : f32
      %68 = arith.mulf %cst_22, %65 : f32
      %69 = arith.addf %67, %68 : f32
      %c0_23 = arith.constant 0 : index
      %c0_24 = arith.constant 0 : index
      %70 = memref.load %arg3[%c0_23, %c0_24] : memref<1x1xf32, #tpu.memory_space<smem>>
      memref.store %69, %arg3[%c0_23, %c0_24] : memref<1x1xf32, #tpu.memory_space<smem>>
      %c0_25 = arith.constant 0 : index
      %71 = memref.load %arg7[%c0_25] : memref<1xf32, #tpu.memory_space<smem>>
      %72 = arith.fptosi %71 : f32 to i32
      %c0_26 = arith.constant 0 : index
      %c0_27 = arith.constant 0 : index
      %73 = memref.load %arg4[%c0_26, %c0_27] : memref<1x1xi32, #tpu.memory_space<smem>>
      memref.store %72, %arg4[%c0_26, %c0_27] : memref<1x1xi32, #tpu.memory_space<smem>>
    } else {
    }
    return
  }
  func.func @transform_0(%arg0: i32) -> (i32, i32) {
    %c0_i32 = arith.constant 0 : i32
    %c0_i32_0 = arith.constant 0 : i32
    return %c0_i32, %arg0 : i32, i32
  }
  func.func @transform_1(%arg0: i32) -> (i32, i32) {
    %c0_i32 = arith.constant 0 : i32
    %c0_i32_0 = arith.constant 0 : i32
    return %c0_i32, %arg0 : i32, i32
  }
  func.func @transform_2(%arg0: i32) -> (i32, i32) {
    %c0_i32 = arith.constant 0 : i32
    %c0_i32_0 = arith.constant 0 : i32
    %c0_i32_1 = arith.constant 0 : i32
    return %c0_i32, %c0_i32_0 : i32, i32
  }
  func.func @transform_3(%arg0: i32) -> (i32, i32) {
    %c0_i32 = arith.constant 0 : i32
    %c0_i32_0 = arith.constant 0 : i32
    %c0_i32_1 = arith.constant 0 : i32
    return %c0_i32, %c0_i32_0 : i32, i32
  }
}

</mosaic_0001>

<bundles_post_ra>
// kernel: tpu_custom_call.1
= control target key start
LH: loop header
LB: loop body
LE: loop exit
PB: predicated region body
PF: predicated region fallthrough
CT: control target
= control target key end

     0   :  { %9 = vsyncpa [#allocation6], 0  ;;  %s281_s0 = inlined_call_operand.hbm [shape: f32[7,128], index: 0, kind: input, shape index: {}]   ;;  %s282_s1 = inlined_call_operand.vmem [shape: s32[1,128], index: 1, kind: input, shape index: {}]   ;;  %s283_s2 = inlined_call_operand.hbm [shape: f32[1,1], index: 2, kind: output, shape index: {0}]   ;;  %s284_s3 = inlined_call_operand.hbm [shape: s32[1,1], index: 3, kind: output, shape index: {1}]  }
   0x1   :  { %10 = vsyncpa [#allocation7], 0 }
   0x2   :  { %11 = vsyncpa [#allocation10], 0  ;;  %s240_s12 = smov [#allocation5]  }
   0x3   :  { %s18_s13 = sshll.u32 %s240_s12, 4  ;;  %s19_s13 = int_to_ptr.vmem [resolvable:$true] %s18_s13 }
   0x4   :  { %s206_s14 = scalar_lea.vmem %s19_s13, 128  ;;  %p211_p1 = scmp.lt.s32.totalorder %s19_s13, %s19_s13 }
   0x5   :  { %p207_p0 = scmp.ne.s32.totalorder %s19_s13, %s206_s14  ;;  %p212_p2 = scmp.lt.s32.totalorder %s206_s14, %s206_s14 }
   0x7   :  { %p213_p3 = por %p212_p2, %p211_p1 }
   0x9   :  { %p214_p4 = pnand %p213_p3, %p207_p0 }
   0xb   :  { %217 = shalt.err (!%p214_p4)
}
   0xc   :  { %21 = dma.hbm_to_vmem [thread:$0]  %s281_s0, 128, %s19_s13, [#allocation6]  }
   0xd   :  { %234 = dma.done.wait [#allocation6], 128  }
   0xe   :  { %235 = vsyncadd [#allocation6], 4294967168  ;;  %v41_v0 = vlaneseq  ;;  %vm51_vm0 = vcmask 1046528   ;;  %v37_v3 = vld [vmem:[#allocation5] sm:$0x7f]  ;;  %vm91_vm2 = vcmask 1040384  }
   0xf   :  { %v38_v4 = vld [vmem:[%s282_s1] sm:$0x1]  ;;  %v105_v6 = vsel %vm51_vm0, %v37_v3, -inf  ;;  %v66_v7 = vrot.slane %v37_v3, 7  ;;  %v69_v8 = vrot.slane %v37_v3, 3  ;;  %v76_v10 = vrot.slane %v37_v3, 5 }
  0x10   :  { %v42_v1 = vshrl.u32 %v41_v0, 7  ;;  %v40_v5 = vand.u32 15, %v38_v4  ;;  %v106_v9 = vrot.slane %v105_v6, 4  ;;  %vm39_vm4 = vcmp.ge.s32.totalorder %v38_v4, 16  ;;  %s242_s23 = smov [#allocation8]   ;;  %s243_s30 = smov [#allocation9]  }
  0x11   :  { %v68_v12 = vmin.f32 %v37_v3, %v66_v7  ;;  %v71_v13 = vmin.f32 %v37_v3, %v69_v8  ;;  %v78_v15 = vmin.f32 %v37_v3, %v76_v10  ;;  %v241_v40 = vmov 0.0  }
  0x12   :  { %v46_v2 = vsub.s32 0, %v42_v1  ;;  %v107_v14 = vmax.f32 %v105_v6, %v106_v9  ;;  %v43_v26 = vcvt.s32.f32 %v42_v1  ;;  %v121_v38 = vcvt.s32.f32 %v40_v5 }
  0x13   :  { %v73_v16 = vrot.slane %v71_v13, 6  ;;  %v80_v19 = vrot.slane %v78_v15, 2  ;;  %v84_v22 = vrot.slane %v68_v12, 2 }
  0x14   :  { %v47_v11 = vrot.slane %v40_v5, %v46_v2  ;;  %v108_v18 = vrot.slane %v107_v14, 2 }
  0x15   :  { %v75_v21 = vadd.f32 %v73_v16, %v68_v12 }
  0x16   :  { %vm48_vm1 = vcmp.eq.s32.totalorder %v42_v1, %v47_v11  ;;  %v109_v23 = vmax.f32 %v107_v14, %v108_v18 }
  0x17   :  { %v49_v17 = vsel %vm48_vm1, %v37_v3, inf  ;;  %v82_v24 = vadd.f32 %v80_v19, %v75_v21 }
  0x18   :  { %v52_v20 = vsel %vm51_vm0, %v49_v17, inf  ;;  %v110_v25 = vrot.slane %v109_v23, 1 }
  0x19   :  { %53 = vmin.xlane.f32.xlu0 %v52_v20  ;;  %v86_v27 = vadd.f32 %v84_v22, %v82_v24 }
  0x1a   :  { %v111_v28 = vmax.f32 %v109_v23, %v110_v25 }
  0x1b   :  { %v89_v29 = vrot.slane %v86_v27, 4 }
  0x1c   :  { %vm112_vm3 = vcmp.eq.f32.partialorder %v37_v3, %v111_v28 }
  0x1d   :  { %v113_v30 = vsel %vm112_vm3, %v43_v26, 7.0  ;;  %v92_v31 = vsel %vm91_vm2, %v89_v29, 0.0 }
  0x1e   :  { %v114_v32 = vsel %vm51_vm0, %v113_v30, inf  ;;  %93 = vadd.xlane.f32.xlu0 %v92_v31 }
  0x1f   :  { %v115_v33 = vrot.slane %v114_v32, 4 }
  0x21   :  { %v116_v34 = vmin.f32 %v114_v32, %v115_v33 }
  0x23   :  { %v117_v35 = vrot.slane %v116_v34, 2 }
  0x25   :  { %v118_v36 = vmin.f32 %v116_v34, %v117_v35 }
  0x27   :  { %v119_v37 = vrot.slane %v118_v36, 1 }
  0x29   :  { %v120_v39 = vmin.f32 %v118_v36, %v119_v37 }
  0x2b   :  { %vm122_vm5 = vcmp.eq.f32.partialorder %v120_v39, %v121_v38 }
  0x2c   :  { %vm123_vm6 = vmand %vm39_vm4, %vm122_vm5 }
  0x2d   :  { %v181_v41 = vsel %vm123_vm6, 1.0, %v241_v40 }
  0x2e   :  { %v127_v42 = vsel %vm91_vm2, %v181_v41, 0.0 }
  0x2f   :  { %128 = vadd.xlane.f32.xlu1 %v127_v42 }
  0xa2   :  { %v54_v43 = vpop.xlane.xlu0 %53 }
  0xa3   :  { %v55_v44 = vrot.slane %v54_v43, 4 }
  0xa5   :  { %v56_v45 = vmin.f32 %v54_v43, %v55_v44 }
  0xa7   :  { %v57_v46 = vrot.slane %v56_v45, 2  ;;  %v94_v48 = vpop.xlane.xlu0 %93 }
  0xa8   :  { %v95_v49 = vrot.slane %v94_v48, 4 }
  0xa9   :  { %v58_v47 = vmin.f32 %v56_v45, %v57_v46 }
  0xaa   :  { %v96_v51 = vadd.f32 %v95_v49, %v94_v48 }
  0xab   :  { %v59_v50 = vrot.slane %v58_v47, 1 }
  0xac   :  { %v97_v53 = vrot.slane %v96_v51, 2 }
  0xad   :  { %v60_v52 = vmin.f32 %v58_v47, %v59_v50 }
  0xae   :  { %v98_v54 = vadd.f32 %v97_v53, %v96_v51 }
  0xaf   :  { %183 = vpush %v60_v52 }
  0xb0   :  { %v99_v55 = vrot.slane %v98_v54, 1 }
  0xb2   :  { %v100_v56 = vadd.f32 %v99_v55, %v98_v54 }
  0xb4   :  { %185 = vpush %v100_v56 }
  0xb8   :  { %v129_v57 = vpop.xlane.xlu1 %128 }
  0xb9   :  { %v130_v58 = vrot.slane %v129_v57, 4 }
  0xbb   :  { %v131_v59 = vadd.f32 %v130_v58, %v129_v57 }
  0xbd   :  { %v132_v60 = vrot.slane %v131_v59, 2 }
  0xbf   :  { %v133_v61 = vadd.f32 %v132_v60, %v131_v59 }
  0xc1   :  { %v134_v62 = vrot.slane %v133_v61, 1 }
  0xc3   :  { %v135_v63 = vadd.f32 %v134_v62, %v133_v61 }
  0xc5   :  { %187 = vpush %v135_v63 }
  0xe0   :  { %s184_s0 = spop %183 }
  0xe1   :  { %s146_s1 = ssub.f32 0.0, %s184_s0 }
  0xe5   :  { %s186_s19 = spop %185 }
  0xe6   :  { %s182_s20 = sadd.f32 -64.0, %s186_s19 }
  0xe8   :  { %s147_s21 = smul.f32 0.001, %s182_s20 }
  0xea   :  { %s148_s22 = sadd.f32 %s147_s21, %s146_s1 }
  0xec   :  { %150 = sst [smem:[#allocation8]] %s148_s22 }
  0xed   :  { %162 = dma.smem_to_hbm %s242_s23, 16, %s283_s2, [#allocation7]  }
  0xf6   :  { %s188_s26 = spop %187 }
  0xf7   :  { %p189_p5 = scmp.lt.s32.totalorder %s188_s26, 0  ;;  %s190_s27 = sceil.f32 %s188_s26 }
  0xf8   :  { %s191_s28 = sfloor.f32 %s188_s26 }
  0xf9   :  { %s286_s27 = smov (!%p189_p5, %s190_s27), %s191_s28 }
  0xfa   :  { %s193_s29 = scvt.f32.s32 %s286_s27 }
  0xfc   :  { %154 = sst [smem:[#allocation9]] %s193_s29 }
  0xfd   :  { %170 = dma.smem_to_hbm %s243_s30, 16, %s284_s3, [#allocation10]  }
  0xfe   :  { %236 = dma.done.wait [#allocation7], 16  }
  0xff   :  { %237 = vsyncadd [#allocation7], 4294967280 }
 0x100   :  { %238 = dma.done.wait [#allocation10], 16  }
 0x101   :  { %239 = vsyncadd [#allocation10], 4294967280 }
 0x102   :  { %177 = sfence }
 0x103   :  { %178 = vsyncpa [#allocation6], 1 }
 0x104   :  { %179 = vsyncpa [#allocation7], 1 }
 0x105   :  { %180 = vsyncpa [#allocation10], 1 }

</bundles_post_ra>
